<compile_context>
chip_gen: v7x
topology: tpu7x:2x2x1
jax: 0.10.0
libtpu: 0.0.40
codegen_flags: <defaults>
</compile_context>

<pallas_src>
import functools

import jax
import jax.numpy as jnp
from jax.experimental import pallas as pl
from jax.experimental.pallas import tpu as pltpu


NFEAT = 4
NHIDDEN = 128
NHIDDEN2 = 35
NCODE = 3

H2P = 128           # nhidden2 zero-padded to a full 128-lane width
XW = 8              # padded lane width of the streamed x input   (x at cols 0:4)
EPSW = 8            # padded lane width of the streamed eps input (eps at cols 0:3)
ZW = 8              # padded latent width fed into the first decoder matmul
HEAD_W = 16         # fused mu|logvar head width
HEAD_MU = 0         # head cols [0, 3)  : mu
HEAD_LV = 8         # head cols [8, 11) : logvar
OUT_W = 16          # output slab width
SLAB_RECON = 0      # out cols [0, 4)   : recon
SLAB_MU = NFEAT     # out cols [4, 7)   : mu
SLAB_LV = NFEAT + NCODE   # out cols [7, 10) : logvar


def _round_up(n, m):
    return ((n + m - 1) // m) * m


def _leaky_relu(x, negative_slope=0.01):
    return jnp.where(x >= 0, x, negative_slope * x)


def infovae_kernel(
    x_ref, eps_ref,
    w1_ref, b1_ref,        # encd : (XW, NHIDDEN) bf16, (1, NHIDDEN) f32
    w2_ref, b2_ref,        # enc2 : (NHIDDEN, H2P) bf16, (1, H2P) f32   (cols >= 35 zero)
    wh_ref, bh_ref,        # mu|lv head : (H2P, HEAD_W) bf16, (1, HEAD_W) f32
    wd1_ref, bd1_ref,      # decd : (ZW, H2P) bf16, (1, H2P) f32
    wd2_ref, bd2_ref,      # dec2 : (H2P, NHIDDEN) bf16, (1, NHIDDEN) f32
    wf_ref, bf_ref,        # fused outp + slab : (NHIDDEN + H2P, OUT_W) bf16, (1, OUT_W) f32
    out_ref,               # (TB, OUT_W) f32 slab: recon | mu | logvar
):
    bf16 = jnp.bfloat16
    f32 = jnp.float32
    x = x_ref[...].astype(bf16)                                           # (TB, 8)

    # ---- encode ----
    h1 = _leaky_relu(jnp.dot(x, w1_ref[...], preferred_element_type=f32) + b1_ref[...])
    h1b = h1.astype(bf16)
    h2 = _leaky_relu(jnp.dot(h1b, w2_ref[...], preferred_element_type=f32) + b2_ref[...])
    h2b = h2.astype(bf16)

    # ---- mu / logvar head (single narrow matmul) ----
    head = jnp.dot(h2b, wh_ref[...], preferred_element_type=f32) + bh_ref[...]   # (TB, 16)
    mu8 = head[:, HEAD_MU:HEAD_MU + 8]                                           # (TB, 8)
    lv8 = head[:, HEAD_LV:HEAD_LV + 8]                                           # (TB, 8)

    # ---- reparameterize (8 lanes; padded cols: lv=0 -> std=1, eps=0, mu=0 -> z=0) ----
    std8 = jnp.exp(0.5 * lv8)
    z8 = eps_ref[...].astype(f32) * std8 + mu8                                    # (TB, 8)

    # ---- decode ----
    d1 = _leaky_relu(jnp.dot(z8.astype(bf16), wd1_ref[...], preferred_element_type=f32)
                     + bd1_ref[...])
    d2 = _leaky_relu(jnp.dot(d1.astype(bf16), wd2_ref[...], preferred_element_type=f32)
                     + bd2_ref[...])

    # ---- fused output: [recon | mu | logvar] from one K=256 matmul on [d2 | h2] ----
    cat = jnp.concatenate([d2.astype(bf16), h2b], axis=-1)                        # (TB, 256)
    out = jnp.dot(cat, wf_ref[...], preferred_element_type=f32) + bf_ref[...]     # (TB, 16)
    out_ref[...] = out.astype(out_ref.dtype)


def pack_params(p):
    """Zero-pad / pack natural (in,out)-layout params into kernel layout (weights bf16)."""
    f32, bf16 = jnp.float32, jnp.bfloat16
    zeros = lambda s: jnp.zeros(s, f32)

    w1 = zeros((XW, NHIDDEN)).at[:NFEAT, :].set(p["w1"])
    b1 = p["b1"].astype(f32)

    w2 = zeros((NHIDDEN, H2P)).at[:, :NHIDDEN2].set(p["w2"])
    b2 = zeros((1, H2P)).at[:, :NHIDDEN2].set(p["b2"])

    wh = zeros((H2P, HEAD_W))
    wh = wh.at[:NHIDDEN2, HEAD_MU:HEAD_MU + NCODE].set(p["wmu"])
    wh = wh.at[:NHIDDEN2, HEAD_LV:HEAD_LV + NCODE].set(p["wlv"])
    bh = zeros((1, HEAD_W))
    bh = bh.at[:, HEAD_MU:HEAD_MU + NCODE].set(p["bmu"])
    bh = bh.at[:, HEAD_LV:HEAD_LV + NCODE].set(p["blv"])

    wd1 = zeros((ZW, H2P)).at[:NCODE, :NHIDDEN2].set(p["wd1"])
    bd1 = zeros((1, H2P)).at[:, :NHIDDEN2].set(p["bd1"])

    wd2 = zeros((H2P, NHIDDEN)).at[:NHIDDEN2, :].set(p["wd2"])
    bd2 = p["bd2"].astype(f32)

    # Final stacked weight: rows 0:128 act on d2 (recon), rows 128:256 act on h2 (mu, logvar).
    wf = zeros((NHIDDEN + H2P, OUT_W))
    wf = wf.at[:NHIDDEN, SLAB_RECON:SLAB_RECON + NFEAT].set(p["wo"])
    wf = wf.at[NHIDDEN:NHIDDEN + NHIDDEN2, SLAB_MU:SLAB_MU + NCODE].set(p["wmu"])
    wf = wf.at[NHIDDEN:NHIDDEN + NHIDDEN2, SLAB_LV:SLAB_LV + NCODE].set(p["wlv"])
    bf_ = zeros((1, OUT_W))
    bf_ = bf_.at[:, SLAB_RECON:SLAB_RECON + NFEAT].set(p["bo"])
    bf_ = bf_.at[:, SLAB_MU:SLAB_MU + NCODE].set(p["bmu"])
    bf_ = bf_.at[:, SLAB_LV:SLAB_LV + NCODE].set(p["blv"])

    return (w1.astype(bf16), b1, w2.astype(bf16), b2, wh.astype(bf16), bh,
            wd1.astype(bf16), bd1, wd2.astype(bf16), bd2, wf.astype(bf16), bf_)


@functools.partial(jax.jit, static_argnames=("block_b",))
def infovae_forward(x, eps, params, *, block_b=1024):
    """InfoVAE forward pass in one Pallas call.

    x:   (B, NFEAT) float32
    eps: (B, NCODE) float32 standard-normal noise for the reparameterization
    params: dict of natural-layout weights (in, out) / biases (1, out)
    Returns (recon, mu, logvar) with shapes (B,4), (B,3), (B,3).
    """
    B = x.shape[0]
    block_b = max(8, (int(block_b) // 8) * 8)       # clamp to a multiple of 8 sublanes
    nt = -(-B // block_b)                           # number of batch tiles
    TB = _round_up(-(-B // nt), 8)                  # evenly-sized tile, multiple of 8
    Bp = nt * TB                                    # padded batch (<= 7 wasted rows per tile)

    # Narrow lane-packed streaming inputs: x at cols 0:4, eps at cols 0:3.
    x_p = jnp.zeros((Bp, XW), jnp.float32).at[:B, :NFEAT].set(x.astype(jnp.float32))
    eps_p = jnp.zeros((Bp, EPSW), jnp.float32).at[:B, :NCODE].set(eps.astype(jnp.float32))

    weights = pack_params(params)
    operands = (x_p, eps_p) + weights

    in_specs = [
        pl.BlockSpec((TB, XW), lambda i: (i, 0)),
        pl.BlockSpec((TB, EPSW), lambda i: (i, 0)),
    ]
    # Constant index_maps -> weights/biases stay VMEM-resident across grid steps.
    in_specs += [pl.BlockSpec(w.shape, lambda i: (0, 0)) for w in weights]

    out_specs = pl.BlockSpec((TB, OUT_W), lambda i: (i, 0))
    out_shape = jax.ShapeDtypeStruct((Bp, OUT_W), jnp.float32)

    flops_per_row = 2 * (XW * NHIDDEN + NHIDDEN * H2P + H2P * HEAD_W
                         + ZW * H2P + H2P * NHIDDEN + (NHIDDEN + H2P) * OUT_W)
    bytes_weights = sum(int(w.size) * w.dtype.itemsize for w in weights)
    cost = pl.CostEstimate(
        flops=Bp * flops_per_row,
        transcendentals=Bp * 8,
        bytes_accessed=4 * Bp * (XW + EPSW + OUT_W) + bytes_weights,
    )

    out = pl.pallas_call(
        infovae_kernel,
        grid=(nt,),
        in_specs=in_specs,
        out_specs=out_specs,
        out_shape=out_shape,
        compiler_params=pltpu.CompilerParams(dimension_semantics=("parallel",)),
        cost_estimate=cost,
    )(*operands)

    recon = out[:B, SLAB_RECON:SLAB_RECON + NFEAT]
    mu = out[:B, SLAB_MU:SLAB_MU + NCODE]
    logvar = out[:B, SLAB_LV:SLAB_LV + NCODE]
    return recon, mu, logvar


def init_params(key):
    """Deterministic PyTorch-Linear-style init: U(-1/sqrt(fan_in), 1/sqrt(fan_in))."""
    def linear(key, fan_in, fan_out):
        kw, kb = jax.random.split(key)
        bound = 1.0 / jnp.sqrt(float(fan_in))
        w = jax.random.uniform(kw, (fan_in, fan_out), jnp.float32, -bound, bound)
        b = jax.random.uniform(kb, (1, fan_out), jnp.float32, -bound, bound)
        return w, b

    keys = jax.random.split(key, 7)
    p = {}
    p["w1"], p["b1"] = linear(keys[0], NFEAT, NHIDDEN)
    p["w2"], p["b2"] = linear(keys[1], NHIDDEN, NHIDDEN2)
    p["wmu"], p["bmu"] = linear(keys[2], NHIDDEN2, NCODE)
    p["wlv"], p["blv"] = linear(keys[3], NHIDDEN2, NCODE)
    p["wd1"], p["bd1"] = linear(keys[4], NCODE, NHIDDEN2)
    p["wd2"], p["bd2"] = linear(keys[5], NHIDDEN2, NHIDDEN)
    p["wo"], p["bo"] = linear(keys[6], NHIDDEN, NFEAT)
    return p


def reference_forward(x, eps, p):
    """Full-precision reference."""
    lrelu = lambda v: jnp.where(v >= 0, v, 0.01 * v)
    h = lrelu(x @ p["w1"] + p["b1"])
    h = lrelu(h @ p["w2"] + p["b2"])
    mu = h @ p["wmu"] + p["bmu"]
    lv = h @ p["wlv"] + p["blv"]
    z = eps * jnp.exp(0.5 * lv) + mu
    d = lrelu(z @ p["wd1"] + p["bd1"])
    d = lrelu(d @ p["wd2"] + p["bd2"])
    recon = d @ p["wo"] + p["bo"]
    return recon, mu, lv


def reference_forward_bf16(x, eps, p):
    """Reference mirroring the kernel's bf16-operand / f32-accumulate matmuls."""
    bf16, f32 = jnp.bfloat16, jnp.float32
    lrelu = lambda v: jnp.where(v >= 0, v, 0.01 * v)
    mm = lambda a, w: jnp.dot(a.astype(bf16), w.astype(bf16), preferred_element_type=f32)
    h = lrelu(mm(x, p["w1"]) + p["b1"])
    h = lrelu(mm(h, p["w2"]) + p["b2"])
    mu = mm(h, p["wmu"]) + p["bmu"]
    lv = mm(h, p["wlv"]) + p["blv"]
    z = eps * jnp.exp(0.5 * lv) + mu
    d = lrelu(mm(z, p["wd1"]) + p["bd1"])
    d = lrelu(mm(d, p["wd2"]) + p["bd2"])
    recon = mm(d, p["wo"]) + p["bo"]
    return recon, mu, lv


if __name__ == "__main__":
    key = jax.random.PRNGKey(0)
    kx, keps, kp = jax.random.split(key, 3)

    B = 6
    x = jax.random.normal(kx, (B, NFEAT), jnp.float32)
    eps = jax.random.normal(keps, (B, NCODE), jnp.float32)
    params = init_params(kp)

    recon, mu, logvar = infovae_forward(x, eps, params)
    jax.block_until_ready((recon, mu, logvar))

    assert recon.shape == (B, NFEAT) and mu.shape == (B, NCODE) and logvar.shape == (B, NCODE)

    # Tight check against a bf16-matmul reference (matches kernel numerics).
    r_b, mu_b, lv_b = reference_forward_bf16(x, eps, params)
    assert jnp.allclose(recon, r_b, atol=1e-2, rtol=1e-2)
    assert jnp.allclose(mu, mu_b, atol=1e-2, rtol=1e-2)
    assert jnp.allclose(logvar, lv_b, atol=1e-2, rtol=1e-2)

    # Loose check against the full-precision reference (bf16 matmul error budget).
    with jax.default_matmul_precision("highest"):
        r_f, mu_f, lv_f = reference_forward(x, eps, params)
    assert jnp.allclose(recon, r_f, atol=6e-2, rtol=6e-2)
    assert jnp.allclose(mu, mu_f, atol=6e-2, rtol=6e-2)
    assert jnp.allclose(logvar, lv_f, atol=6e-2, rtol=6e-2)

    print("KERNEL_OK")
</pallas_src>

<mosaic_0001>
module attributes {stable_mosaic.version = 11 : i64} {
  func.func @infovae_kernel(%arg0: i32, %arg1: memref<8x8xf32, #tpu.memory_space<vmem>>, %arg2: memref<8x8xf32, #tpu.memory_space<vmem>>, %arg3: memref<8x128xbf16, #tpu.memory_space<vmem>>, %arg4: memref<1x128xf32, #tpu.memory_space<vmem>>, %arg5: memref<128x128xbf16, #tpu.memory_space<vmem>>, %arg6: memref<1x128xf32, #tpu.memory_space<vmem>>, %arg7: memref<128x16xbf16, #tpu.memory_space<vmem>>, %arg8: memref<1x16xf32, #tpu.memory_space<vmem>>, %arg9: memref<8x128xbf16, #tpu.memory_space<vmem>>, %arg10: memref<1x128xf32, #tpu.memory_space<vmem>>, %arg11: memref<128x128xbf16, #tpu.memory_space<vmem>>, %arg12: memref<1x128xf32, #tpu.memory_space<vmem>>, %arg13: memref<256x16xbf16, #tpu.memory_space<vmem>>, %arg14: memref<1x16xf32, #tpu.memory_space<vmem>>, %arg15: memref<8x16xf32, #tpu.memory_space<vmem>>) attributes {dimension_semantics = [#tpu.dimension_semantics<parallel>], iteration_bounds = array<i64: 1>, scalar_prefetch = 0 : i64, scratch_operands = 0 : i64, tpu.core_type = #tpu.core_type<tc>, window_params = [{transform_indices = @transform_0, window_bounds = array<i64: 8, 8>}, {transform_indices = @transform_1, window_bounds = array<i64: 8, 8>}, {pipeline_mode = #tpu.pipeline_mode<synchronous>, transform_indices = @transform_2, window_bounds = array<i64: 8, 128>}, {pipeline_mode = #tpu.pipeline_mode<synchronous>, transform_indices = @transform_3, window_bounds = array<i64: 1, 128>}, {pipeline_mode = #tpu.pipeline_mode<synchronous>, transform_indices = @transform_4, window_bounds = array<i64: 128, 128>}, {pipeline_mode = #tpu.pipeline_mode<synchronous>, transform_indices = @transform_5, window_bounds = array<i64: 1, 128>}, {pipeline_mode = #tpu.pipeline_mode<synchronous>, transform_indices = @transform_6, window_bounds = array<i64: 128, 16>}, {pipeline_mode = #tpu.pipeline_mode<synchronous>, transform_indices = @transform_7, window_bounds = array<i64: 1, 16>}, {pipeline_mode = #tpu.pipeline_mode<synchronous>, transform_indices = @transform_8, window_bounds = array<i64: 8, 128>}, {pipeline_mode = #tpu.pipeline_mode<synchronous>, transform_indices = @transform_9, window_bounds = array<i64: 1, 128>}, {pipeline_mode = #tpu.pipeline_mode<synchronous>, transform_indices = @transform_10, window_bounds = array<i64: 128, 128>}, {pipeline_mode = #tpu.pipeline_mode<synchronous>, transform_indices = @transform_11, window_bounds = array<i64: 1, 128>}, {pipeline_mode = #tpu.pipeline_mode<synchronous>, transform_indices = @transform_12, window_bounds = array<i64: 256, 16>}, {pipeline_mode = #tpu.pipeline_mode<synchronous>, transform_indices = @transform_13, window_bounds = array<i64: 1, 16>}, {transform_indices = @transform_14, window_bounds = array<i64: 8, 16>}]} {
    %c0 = arith.constant 0 : index
    %c0_0 = arith.constant 0 : index
    %0 = vector.load %arg1[%c0, %c0_0] : memref<8x8xf32, #tpu.memory_space<vmem>>, vector<8x8xf32>
    %1 = arith.truncf %0 : vector<8x8xf32> to vector<8x8xbf16>
    %c0_1 = arith.constant 0 : index
    %c0_2 = arith.constant 0 : index
    %2 = vector.load %arg3[%c0_1, %c0_2] : memref<8x128xbf16, #tpu.memory_space<vmem>>, vector<8x128xbf16>
    %cst = arith.constant dense<0.000000e+00> : vector<8x128xf32>
    %3 = tpu.matmul %1, %2, %cst {dimension_numbers = #tpu.dot_dimension_numbers<[1], [0], [0], [1], [0, 0, 1, 1], [], []>} : vector<8x8xbf16>, vector<8x128xbf16>, vector<8x128xf32> -> vector<8x128xf32>
    %c0_3 = arith.constant 0 : index
    %c0_4 = arith.constant 0 : index
    %4 = vector.load %arg4[%c0_3, %c0_4] : memref<1x128xf32, #tpu.memory_space<vmem>>, vector<1x128xf32>
    %5 = vector.broadcast %4 : vector<1x128xf32> to vector<8x128xf32>
    %6 = arith.addf %3, %5 : vector<8x128xf32>
    %cst_5 = arith.constant 0.000000e+00 : f32
    %7 = vector.broadcast %cst_5 : f32 to vector<8x128xf32>
    %8 = arith.cmpf oge, %6, %7 : vector<8x128xf32>
    %cst_6 = arith.constant 0.00999999977 : f32
    %9 = vector.broadcast %cst_6 : f32 to vector<8x128xf32>
    %10 = arith.mulf %9, %6 : vector<8x128xf32>
    %11 = arith.select %8, %6, %10 : vector<8x128xi1>, vector<8x128xf32>
    %12 = arith.truncf %11 : vector<8x128xf32> to vector<8x128xbf16>
    %c0_7 = arith.constant 0 : index
    %c0_8 = arith.constant 0 : index
    %13 = vector.load %arg5[%c0_7, %c0_8] : memref<128x128xbf16, #tpu.memory_space<vmem>>, vector<128x128xbf16>
    %cst_9 = arith.constant dense<0.000000e+00> : vector<8x128xf32>
    %14 = tpu.matmul %12, %13, %cst_9 {dimension_numbers = #tpu.dot_dimension_numbers<[1], [0], [0], [1], [0, 0, 1, 1], [], []>} : vector<8x128xbf16>, vector<128x128xbf16>, vector<8x128xf32> -> vector<8x128xf32>
    %c0_10 = arith.constant 0 : index
    %c0_11 = arith.constant 0 : index
    %15 = vector.load %arg6[%c0_10, %c0_11] : memref<1x128xf32, #tpu.memory_space<vmem>>, vector<1x128xf32>
    %16 = vector.broadcast %15 : vector<1x128xf32> to vector<8x128xf32>
    %17 = arith.addf %14, %16 : vector<8x128xf32>
    %cst_12 = arith.constant 0.000000e+00 : f32
    %18 = vector.broadcast %cst_12 : f32 to vector<8x128xf32>
    %19 = arith.cmpf oge, %17, %18 : vector<8x128xf32>
    %cst_13 = arith.constant 0.00999999977 : f32
    %20 = vector.broadcast %cst_13 : f32 to vector<8x128xf32>
    %21 = arith.mulf %20, %17 : vector<8x128xf32>
    %22 = arith.select %19, %17, %21 : vector<8x128xi1>, vector<8x128xf32>
    %23 = arith.truncf %22 : vector<8x128xf32> to vector<8x128xbf16>
    %c0_14 = arith.constant 0 : index
    %c0_15 = arith.constant 0 : index
    %24 = vector.load %arg7[%c0_14, %c0_15] : memref<128x16xbf16, #tpu.memory_space<vmem>>, vector<128x16xbf16>
    %cst_16 = arith.constant dense<0.000000e+00> : vector<8x16xf32>
    %25 = tpu.matmul %23, %24, %cst_16 {dimension_numbers = #tpu.dot_dimension_numbers<[1], [0], [0], [1], [0, 0, 1, 1], [], []>} : vector<8x128xbf16>, vector<128x16xbf16>, vector<8x16xf32> -> vector<8x16xf32>
    %c0_17 = arith.constant 0 : index
    %c0_18 = arith.constant 0 : index
    %26 = vector.load %arg8[%c0_17, %c0_18] : memref<1x16xf32, #tpu.memory_space<vmem>>, vector<1x16xf32>
    %27 = vector.broadcast %26 : vector<1x16xf32> to vector<8x16xf32>
    %28 = arith.addf %25, %27 : vector<8x16xf32>
    %29 = vector.extract_strided_slice %28 {offsets = [0, 0], sizes = [8, 8], strides = [1, 1]} : vector<8x16xf32> to vector<8x8xf32>
    %30 = vector.extract_strided_slice %28 {offsets = [0, 8], sizes = [8, 8], strides = [1, 1]} : vector<8x16xf32> to vector<8x8xf32>
    %cst_19 = arith.constant 5.000000e-01 : f32
    %31 = vector.broadcast %cst_19 : f32 to vector<8x8xf32>
    %32 = arith.mulf %31, %30 : vector<8x8xf32>
    %33 = math.exp %32 : vector<8x8xf32>
    %c0_20 = arith.constant 0 : index
    %c0_21 = arith.constant 0 : index
    %34 = vector.load %arg2[%c0_20, %c0_21] : memref<8x8xf32, #tpu.memory_space<vmem>>, vector<8x8xf32>
    %35 = arith.mulf %34, %33 : vector<8x8xf32>
    %36 = arith.addf %35, %29 : vector<8x8xf32>
    %37 = arith.truncf %36 : vector<8x8xf32> to vector<8x8xbf16>
    %c0_22 = arith.constant 0 : index
    %c0_23 = arith.constant 0 : index
    %38 = vector.load %arg9[%c0_22, %c0_23] : memref<8x128xbf16, #tpu.memory_space<vmem>>, vector<8x128xbf16>
    %cst_24 = arith.constant dense<0.000000e+00> : vector<8x128xf32>
    %39 = tpu.matmul %37, %38, %cst_24 {dimension_numbers = #tpu.dot_dimension_numbers<[1], [0], [0], [1], [0, 0, 1, 1], [], []>} : vector<8x8xbf16>, vector<8x128xbf16>, vector<8x128xf32> -> vector<8x128xf32>
    %c0_25 = arith.constant 0 : index
    %c0_26 = arith.constant 0 : index
    %40 = vector.load %arg10[%c0_25, %c0_26] : memref<1x128xf32, #tpu.memory_space<vmem>>, vector<1x128xf32>
    %41 = vector.broadcast %40 : vector<1x128xf32> to vector<8x128xf32>
    %42 = arith.addf %39, %41 : vector<8x128xf32>
    %cst_27 = arith.constant 0.000000e+00 : f32
    %43 = vector.broadcast %cst_27 : f32 to vector<8x128xf32>
    %44 = arith.cmpf oge, %42, %43 : vector<8x128xf32>
    %cst_28 = arith.constant 0.00999999977 : f32
    %45 = vector.broadcast %cst_28 : f32 to vector<8x128xf32>
    %46 = arith.mulf %45, %42 : vector<8x128xf32>
    %47 = arith.select %44, %42, %46 : vector<8x128xi1>, vector<8x128xf32>
    %48 = arith.truncf %47 : vector<8x128xf32> to vector<8x128xbf16>
    %c0_29 = arith.constant 0 : index
    %c0_30 = arith.constant 0 : index
    %49 = vector.load %arg11[%c0_29, %c0_30] : memref<128x128xbf16, #tpu.memory_space<vmem>>, vector<128x128xbf16>
    %cst_31 = arith.constant dense<0.000000e+00> : vector<8x128xf32>
    %50 = tpu.matmul %48, %49, %cst_31 {dimension_numbers = #tpu.dot_dimension_numbers<[1], [0], [0], [1], [0, 0, 1, 1], [], []>} : vector<8x128xbf16>, vector<128x128xbf16>, vector<8x128xf32> -> vector<8x128xf32>
    %c0_32 = arith.constant 0 : index
    %c0_33 = arith.constant 0 : index
    %51 = vector.load %arg12[%c0_32, %c0_33] : memref<1x128xf32, #tpu.memory_space<vmem>>, vector<1x128xf32>
    %52 = vector.broadcast %51 : vector<1x128xf32> to vector<8x128xf32>
    %53 = arith.addf %50, %52 : vector<8x128xf32>
    %cst_34 = arith.constant 0.000000e+00 : f32
    %54 = vector.broadcast %cst_34 : f32 to vector<8x128xf32>
    %55 = arith.cmpf oge, %53, %54 : vector<8x128xf32>
    %cst_35 = arith.constant 0.00999999977 : f32
    %56 = vector.broadcast %cst_35 : f32 to vector<8x128xf32>
    %57 = arith.mulf %56, %53 : vector<8x128xf32>
    %58 = arith.select %55, %53, %57 : vector<8x128xi1>, vector<8x128xf32>
    %59 = arith.truncf %58 : vector<8x128xf32> to vector<8x128xbf16>
    %60 = tpu.concatenate %59, %23 in 1 : vector<8x128xbf16>, vector<8x128xbf16> -> vector<8x256xbf16>
    %c0_36 = arith.constant 0 : index
    %c0_37 = arith.constant 0 : index
    %61 = vector.load %arg13[%c0_36, %c0_37] : memref<256x16xbf16, #tpu.memory_space<vmem>>, vector<256x16xbf16>
    %cst_38 = arith.constant dense<0.000000e+00> : vector<8x16xf32>
    %62 = tpu.matmul %60, %61, %cst_38 {dimension_numbers = #tpu.dot_dimension_numbers<[1], [0], [0], [1], [0, 0, 1, 1], [], []>} : vector<8x256xbf16>, vector<256x16xbf16>, vector<8x16xf32> -> vector<8x16xf32>
    %c0_39 = arith.constant 0 : index
    %c0_40 = arith.constant 0 : index
    %63 = vector.load %arg14[%c0_39, %c0_40] : memref<1x16xf32, #tpu.memory_space<vmem>>, vector<1x16xf32>
    %64 = vector.broadcast %63 : vector<1x16xf32> to vector<8x16xf32>
    %65 = arith.addf %62, %64 : vector<8x16xf32>
    %c0_41 = arith.constant 0 : index
    %c0_42 = arith.constant 0 : index
    %66 = vector.load %arg15[%c0_41, %c0_42] : memref<8x16xf32, #tpu.memory_space<vmem>>, vector<8x16xf32>
    tpu.vector_store %arg15[%c0_41, %c0_42], %65 {strides = array<i32>} : memref<8x16xf32, #tpu.memory_space<vmem>>, vector<8x16xf32>,
    return
  }
  func.func @transform_0(%arg0: i32) -> (i32, i32) {
    %c0_i32 = arith.constant 0 : i32
    %c0_i32_0 = arith.constant 0 : i32
    return %arg0, %c0_i32 : i32, i32
  }
  func.func @transform_1(%arg0: i32) -> (i32, i32) {
    %c0_i32 = arith.constant 0 : i32
    %c0_i32_0 = arith.constant 0 : i32
    return %arg0, %c0_i32 : i32, i32
  }
  func.func @transform_2(%arg0: i32) -> (i32, i32) {
    %c0_i32 = arith.constant 0 : i32
    %c0_i32_0 = arith.constant 0 : i32
    %c0_i32_1 = arith.constant 0 : i32
    return %c0_i32, %c0_i32_0 : i32, i32
  }
  func.func @transform_3(%arg0: i32) -> (i32, i32) {
    %c0_i32 = arith.constant 0 : i32
    %c0_i32_0 = arith.constant 0 : i32
    %c0_i32_1 = arith.constant 0 : i32
    return %c0_i32, %c0_i32_0 : i32, i32
  }
  func.func @transform_4(%arg0: i32) -> (i32, i32) {
    %c0_i32 = arith.constant 0 : i32
    %c0_i32_0 = arith.constant 0 : i32
    %c0_i32_1 = arith.constant 0 : i32
    return %c0_i32, %c0_i32_0 : i32, i32
  }
  func.func @transform_5(%arg0: i32) -> (i32, i32) {
    %c0_i32 = arith.constant 0 : i32
    %c0_i32_0 = arith.constant 0 : i32
    %c0_i32_1 = arith.constant 0 : i32
    return %c0_i32, %c0_i32_0 : i32, i32
  }
  func.func @transform_6(%arg0: i32) -> (i32, i32) {
    %c0_i32 = arith.constant 0 : i32
    %c0_i32_0 = arith.constant 0 : i32
    %c0_i32_1 = arith.constant 0 : i32
    return %c0_i32, %c0_i32_0 : i32, i32
  }
  func.func @transform_7(%arg0: i32) -> (i32, i32) {
    %c0_i32 = arith.constant 0 : i32
    %c0_i32_0 = arith.constant 0 : i32
    %c0_i32_1 = arith.constant 0 : i32
    return %c0_i32, %c0_i32_0 : i32, i32
  }
  func.func @transform_8(%arg0: i32) -> (i32, i32) {
    %c0_i32 = arith.constant 0 : i32
    %c0_i32_0 = arith.constant 0 : i32
    %c0_i32_1 = arith.constant 0 : i32
    return %c0_i32, %c0_i32_0 : i32, i32
  }
  func.func @transform_9(%arg0: i32) -> (i32, i32) {
    %c0_i32 = arith.constant 0 : i32
    %c0_i32_0 = arith.constant 0 : i32
    %c0_i32_1 = arith.constant 0 : i32
    return %c0_i32, %c0_i32_0 : i32, i32
  }
  func.func @transform_10(%arg0: i32) -> (i32, i32) {
    %c0_i32 = arith.constant 0 : i32
    %c0_i32_0 = arith.constant 0 : i32
    %c0_i32_1 = arith.constant 0 : i32
    return %c0_i32, %c0_i32_0 : i32, i32
  }
  func.func @transform_11(%arg0: i32) -> (i32, i32) {
    %c0_i32 = arith.constant 0 : i32
    %c0_i32_0 = arith.constant 0 : i32
    %c0_i32_1 = arith.constant 0 : i32
    return %c0_i32, %c0_i32_0 : i32, i32
  }
  func.func @transform_12(%arg0: i32) -> (i32, i32) {
    %c0_i32 = arith.constant 0 : i32
    %c0_i32_0 = arith.constant 0 : i32
    %c0_i32_1 = arith.constant 0 : i32
    return %c0_i32, %c0_i32_0 : i32, i32
  }
  func.func @transform_13(%arg0: i32) -> (i32, i32) {
    %c0_i32 = arith.constant 0 : i32
    %c0_i32_0 = arith.constant 0 : i32
    %c0_i32_1 = arith.constant 0 : i32
    return %c0_i32, %c0_i32_0 : i32, i32
  }
  func.func @transform_14(%arg0: i32) -> (i32, i32) {
    %c0_i32 = arith.constant 0 : i32
    %c0_i32_0 = arith.constant 0 : i32
    return %arg0, %c0_i32 : i32, i32
  }
}

</mosaic_0001>

<bundles_post_ra>
// kernel: infovae_forward.1
= control target key start
LH: loop header
LB: loop body
LE: loop exit
PB: predicated region body
PF: predicated region fallthrough
CT: control target
= control target key end

     0   :  { %vm62_vm0 = vcmask 1043456   ;;  %v919_v0 = vmov 0.0   ;;  %vm920_vm1 = vmmov 0   ;;  %vm58_vm2 = vcmask 64512   ;;  %s1190_s2 = inlined_call_operand.vmem [shape: bf16[8,128], index: 2, kind: input, shape index: {}]   ;;  %s1191_s0 = inlined_call_operand.vmem [shape: f32[8,8], index: 0, kind: input, shape index: {}]   ;;  %s1192_s4 = inlined_call_operand.vmem [shape: bf16[128,128], index: 4, kind: input, shape index: {}]   ;;  %s1193_s6 = inlined_call_operand.vmem [shape: bf16[128,16], index: 6, kind: input, shape index: {}]   ;;  %s1194_s3 = inlined_call_operand.vmem [shape: f32[1,128], index: 3, kind: input, shape index: {}]   ;;  %s1195_s8 = inlined_call_operand.vmem [shape: bf16[8,128], index: 8, kind: input, shape index: {}]   ;;  %s1196_s5 = inlined_call_operand.vmem [shape: f32[1,128], index: 5, kind: input, shape index: {}]   ;;  %s1197_s7 = inlined_call_operand.vmem [shape: f32[1,16], index: 7, kind: input, shape index: {}]   ;;  %s1198_s10 = inlined_call_operand.vmem [shape: bf16[128,128], index: 10, kind: input, shape index: {}]   ;;  %s1199_s1 = inlined_call_operand.vmem [shape: f32[8,8], index: 1, kind: input, shape index: {}]   ;;  %s1200_s12 = inlined_call_operand.vmem [shape: bf16[256,16], index: 12, kind: input, shape index: {}]   ;;  %s1201_s9 = inlined_call_operand.vmem [shape: f32[1,128], index: 9, kind: input, shape index: {}]   ;;  %s1202_s11 = inlined_call_operand.vmem [shape: f32[1,128], index: 11, kind: input, shape index: {}]   ;;  %s1203_s13 = inlined_call_operand.vmem [shape: f32[1,16], index: 13, kind: input, shape index: {}]   ;;  %s1204_s14 = inlined_call_operand.vmem [shape: f32[8,16], index: 14, kind: output, shape index: {}]  }
   0x1   :  { %802 = vmatprep.subr.bf16.mxu0 %v919_v0  ;;  %v50_v1 = vld [vmem:[%s1190_s2] sm:$0xf]  ;;  %804 = vmatprep.mubr.msk.bf16.mxu0 %vm920_vm1, %v919_v0  ;;  %v878_v6 = vld [vmem:[%s1192_s4 + $0x8] sm:$0xff]   ;;  %v879_v7 = vld [vmem:[%s1192_s4 + $0x10] sm:$0xff]   ;;  %vm695_vm7 = vcmask 130048  }
   0x2   :  { %v48_v2 = vld [vmem:[%s1191_s0] sm:$0xff]  ;;  %v64_v3 = vsel %vm62_vm0, %v50_v1, 0  ;;  %808 = vmatprep.subr.bf16.mxu1 %v919_v0  ;;  %824 = vmatprep.mubr.msk.bf16.mxu1 %vm920_vm1, %v919_v0  ;;  %v880_v8 = vld [vmem:[%s1192_s4 + $0x18] sm:$0xff]   ;;  %v882_v10 = vld [vmem:[%s1192_s4 + $0x28] sm:$0xff]  }
   0x3   :  { %v49_v4 = vpack.c.bf16 %v48_v2, %v48_v2  ;;  %803 = vmatpush3.bf16.msra.mxu0 %v64_v3  ;;  %v877_v5 = vld [vmem:[%s1192_s4] sm:$0xff]   ;;  %v883_v11 = vld [vmem:[%s1192_s4 + $0x30] sm:$0xff]   ;;  %v884_v12 = vld [vmem:[%s1192_s4 + $0x38] sm:$0xff]  }
   0x4   :  { %828 = vmatprep.subr.bf16.mxu0 %v919_v0  ;;  %809 = vmatpush3.bf16.msra.mxu1 %v877_v5  ;;  %v881_v9 = vld [vmem:[%s1192_s4 + $0x20] sm:$0xff]   ;;  %v886_v14 = vld [vmem:[%s1193_s6 + $0x8] sm:$0xff]   ;;  %v887_v15 = vld [vmem:[%s1193_s6 + $0x10] sm:$0xff]  }
   0x5   :  { %810 = vmatprep.subr.bf16.mxu1 %v919_v0  ;;  %v885_v13 = vld [vmem:[%s1193_s6] sm:$0xff]   ;;  %v888_v16 = vld [vmem:[%s1193_s6 + $0x18] sm:$0xff]   ;;  %v890_v18 = vld [vmem:[%s1193_s6 + $0x28] sm:$0xff]  }
   0x6   :  { %805 = vmatmul.mubr.msk.bf16.vlgmr.msra.gmra.mrb[0].mxu0 %vm58_vm2, %v49_v4  ;;  %v889_v17 = vld [vmem:[%s1193_s6 + $0x20] sm:$0xff]   ;;  %v891_v30 = vld [vmem:[%s1193_s6 + $0x30] sm:$0xff]   ;;  %v892_v31 = vld [vmem:[%s1193_s6 + $0x38] sm:$0xff]  }
   0x7   :  { %844 = vmatprep.mubr.msk.bf16.mxu0 %vm920_vm1, %v919_v0  ;;  %829 = vmatpush3.bf16.msra.mxu0 %v885_v13  ;;  %v701_v19 = vld [vmem:[%s1194_s3] ss:$0 sm:$0xff]  ;;  %v894_v50 = vld [vmem:[%s1198_s10 + $0x8] sm:$0xff]   ;;  %v895_v52 = vld [vmem:[%s1198_s10 + $0x10] sm:$0xff]  }
   0x8   :  { %811 = vmatpush3.bf16.msra.mxu1 %v878_v6  ;;  %830 = vmatprep.subr.bf16.mxu0 %v919_v0  ;;  %v347_v24 = vld [vmem:[%s1195_s8] sm:$0xf]  ;;  %v896_v53 = vld [vmem:[%s1198_s10 + $0x18] sm:$0xff]   ;;  %v898_v55 = vld [vmem:[%s1198_s10 + $0x28] sm:$0xff]  }
   0x9   :  { %812 = vmatprep.subr.bf16.mxu1 %v919_v0  ;;  %v359_v28 = vsel %vm62_vm0, %v347_v24, 0  ;;  %v703_v32 = vld [vmem:[%s1196_s5] ss:$0 sm:$0xff]  ;;  %v899_v61 = vld [vmem:[%s1198_s10 + $0x30] sm:$0xff]   ;;  %v900_v62 = vld [vmem:[%s1198_s10 + $0x38] sm:$0xff]  }
   0xa   :  { %v712_v41 = vld [vmem:[%s1197_s7] ss:$0 sm:$0xff]  ;;  %s921_s7 = smov 120   ;;  %v903_v2 = vld [vmem:[%s1200_s12 + $0x48] sm:$0xff]   ;;  %v905_v3 = vld [vmem:[%s1200_s12 + $0x50] sm:$0xff]  }
   0xb   :  { %831 = vmatpush3.bf16.msra.mxu0 %v886_v14  ;;  %v893_v49 = vld [vmem:[%s1198_s10] sm:$0xff]   ;;  %v906_v4 = vld [vmem:[%s1200_s12 + $0x10] sm:$0xff]   ;;  %v907_v5 = vld [vmem:[%s1200_s12 + $0x58] sm:$0xff]  }
   0xc   :  { %813 = vmatpush3.bf16.msra.mxu1 %v879_v7  ;;  %832 = vmatprep.subr.bf16.mxu0 %v919_v0  ;;  %v897_v54 = vld [vmem:[%s1198_s10 + $0x20] sm:$0xff]   ;;  %v908_v6 = vld [vmem:[%s1200_s12 + $0x18] sm:$0xff]  }
   0xd   :  { %814 = vmatprep.subr.bf16.mxu1 %v919_v0  ;;  %v339_v56 = vld [vmem:[%s1199_s1] sm:$0xff] }
   0xe   :  { %v901_v63 = vld [vmem:[%s1200_s12 + $0x40] sm:$0xff]  }
   0xf   :  { %833 = vmatpush3.bf16.msra.mxu0 %v887_v15  ;;  %v902_v1 = vld [vmem:[%s1200_s12] sm:$0xff]  }
  0x10   :  { %815 = vmatpush3.bf16.msra.mxu1 %v880_v8  ;;  %834 = vmatprep.subr.bf16.mxu0 %v919_v0  ;;  %v909_v7 = vld [vmem:[%s1200_s12 + $0x60] sm:$0xff]  }
  0x11   :  { %816 = vmatprep.subr.bf16.mxu1 %v919_v0  ;;  %v910_v8 = vld [vmem:[%s1200_s12 + $0x20] sm:$0xff]  }
  0x12   :  { %v723_v24 = vld [vmem:[%s1202_s11] ss:$0 sm:$0xff] }
  0x13   :  { %835 = vmatpush3.bf16.msra.mxu0 %v888_v16 }
  0x14   :  { %817 = vmatpush3.bf16.msra.mxu1 %v881_v9  ;;  %836 = vmatprep.subr.bf16.mxu0 %v919_v0  ;;  %v911_v9 = vld [vmem:[%s1200_s12 + $0x68] sm:$0xff]  }
  0x15   :  { %818 = vmatprep.subr.bf16.mxu1 %v919_v0 }
  0x17   :  { %837 = vmatpush3.bf16.msra.mxu0 %v889_v17 }
  0x18   :  { %819 = vmatpush3.bf16.msra.mxu1 %v882_v10  ;;  %838 = vmatprep.subr.bf16.mxu0 %v919_v0  ;;  %v912_v10 = vld [vmem:[%s1200_s12 + $0x28] sm:$0xff]  }
  0x19   :  { %820 = vmatprep.subr.bf16.mxu1 %v919_v0 }
  0x1b   :  { %839 = vmatpush3.bf16.msra.mxu0 %v890_v18 }
  0x1c   :  { %821 = vmatpush3.bf16.msra.mxu1 %v883_v11  ;;  %840 = vmatprep.subr.bf16.mxu0 %v919_v0  ;;  %v721_v11 = vld [vmem:[%s1201_s9] ss:$0 sm:$0xff] }
  0x1d   :  { %822 = vmatprep.subr.bf16.mxu1 %v919_v0 }
  0x1f   :  { %841 = vmatpush3.bf16.msra.mxu0 %v891_v30 }
  0x20   :  { %823 = vmatpush3.bf16.msra.mxu1 %v884_v12  ;;  %842 = vmatprep.subr.bf16.mxu0 %v919_v0 }
  0x21   :  { %848 = vmatprep.subr.bf16.mxu1 %v919_v0 }
  0x23   :  { %843 = vmatpush3.bf16.msra.mxu0 %v892_v31 }
  0x24   :  { %854 = vmatprep.subr.bf16.mxu0 %v919_v0 }
  0xd9   :  { %v100_v20 = vpop.f32.mrb[0].mxu0 }
  0xda   :  { %v101_v21 = vadd.f32 %v701_v19, %v100_v20  ;;  %v806_v22 = vpop.f32.mrb[1].mxu0  ;;  %v913_v20 = vld [vmem:[%s1200_s12 + $0x70] sm:$0xff]  }
  0xdb   :  { %v103_v23 = vpop.f32.mrb[2].mxu0  ;;  %v915_v22 = vld [vmem:[%s1200_s12 + $0x78] sm:$0xff]  }
  0xdc   :  { %vm106_vm3 = vcmp.ge.f32.partialorder %v101_v21, 0.0  ;;  %v107_v25 = vmul.f32 0.01, %v101_v21  ;;  %v807_v26 = vpop.f32.mrb[3].mxu0  ;;  %v916_v23 = vld [vmem:[%s1200_s12 + $0x38] sm:$0xff]  }
  0xde   :  { %v108_v27 = vsel %vm106_vm3, %v101_v21, %v107_v25  ;;  %v914_v21 = vld [vmem:[%s1200_s12 + $0x30] sm:$0xff]  }
  0xdf   :  { %v109_v29 = vpack.c.bf16 %v108_v27, %v108_v27 }
  0xe1   :  { %825 = vmatmul.mubr.bf16.vlgmr.msra.gmra.mrb[0].mxu1 %v109_v29 }
  0xe2   :  { %849 = vmatpush3.bf16.msra.mxu1 %v359_v28  ;;  %850 = vmatprep.mubr.msk.bf16.mxu1 %vm920_vm1, %v919_v0 }
  0xe3   :  { %780 = vmatprep.subr.bf16.mxu1 %v901_v63 }
 0x1b4   :  { %v215_v33 = vpop.f32.mrb[0].mxu1 }
 0x1b5   :  { %v216_v34 = vadd.f32 %v703_v32, %v215_v33  ;;  %v826_v35 = vpop.f32.mrb[1].mxu1 }
 0x1b6   :  { %v218_v36 = vpop.f32.mrb[2].mxu1 }
 0x1b7   :  { %vm221_vm4 = vcmp.ge.f32.partialorder %v216_v34, 0.0  ;;  %v222_v37 = vmul.f32 0.01, %v216_v34  ;;  %v827_v38 = vpop.f32.mrb[3].mxu1 }
 0x1b9   :  { %v223_v39 = vsel %vm221_vm4, %v216_v34, %v222_v37  ;;  %v732_v34 = vld [vmem:[%s1203_s13] ss:$0 sm:$0xff] }
 0x1ba   :  { %v224_v40 = vpack.c.bf16 %v223_v39, %v223_v39 }
 0x1bc   :  { %845 = vmatmul.mubr.bf16.vlgmr.msra.gmra.mrb[4].mxu0 %v224_v40 }
 0x1bd   :  { %870 = vmatprep.mubr.msk.bf16.mxu0 %vm920_vm1, %v919_v0  ;;  %855 = vmatpush3.bf16.msra.mxu0 %v893_v49 }
 0x1be   :  { %856 = vmatprep.subr.bf16.mxu0 %v919_v0 }
 0x1c1   :  { %857 = vmatpush3.bf16.msra.mxu0 %v894_v50 }
 0x1c2   :  { %858 = vmatprep.subr.bf16.mxu0 %v919_v0 }
 0x1c5   :  { %859 = vmatpush3.bf16.msra.mxu0 %v895_v52 }
 0x1c6   :  { %860 = vmatprep.subr.bf16.mxu0 %v919_v0 }
 0x1c9   :  { %861 = vmatpush3.bf16.msra.mxu0 %v896_v53 }
 0x1ca   :  { %862 = vmatprep.subr.bf16.mxu0 %v919_v0 }
 0x1cd   :  { %863 = vmatpush3.bf16.msra.mxu0 %v897_v54 }
 0x1ce   :  { %864 = vmatprep.subr.bf16.mxu0 %v919_v0 }
 0x1d1   :  { %865 = vmatpush3.bf16.msra.mxu0 %v898_v55 }
 0x1d2   :  { %866 = vmatprep.subr.bf16.mxu0 %v919_v0 }
 0x1d5   :  { %867 = vmatpush3.bf16.msra.mxu0 %v899_v61 }
 0x1d6   :  { %868 = vmatprep.subr.bf16.mxu0 %v919_v0  ;;  %v904_v0 = vld [vmem:[%s1200_s12 + $0x8] sm:$0xff]  }
 0x1d9   :  { %869 = vmatpush3.bf16.msra.mxu0 %v900_v62 }
 0x28f   :  { %v330_v42 = vpop.f32.mrb[4].mxu0 }
 0x290   :  { %v331_v43 = vadd.f32 %v712_v41, %v330_v42  ;;  %v846_v44 = vpop.f32.mrb[5].mxu0 }
 0x291   :  { %v333_v45 = vpop.f32.mrb[6].mxu0 }
 0x292   :  { %v336_v46 = vmul.f32 0.5, %v331_v43  ;;  %v847_v47 = vpop.f32.mrb[7].mxu0 }
 0x294   :  { %v337_v48 = vmul.f32 1.442695, %v336_v46 }
 0x296   :  { %917 = vpow2.f32 %v337_v48 }
 0x2a0   :  { %v918_v51 = vpop.eup %917 }
 0x2a1   :  { %341 = vrot.lane.b32.xlu0 %v918_v51, %s921_s7 }
 0x313   :  { %v342_v57 = vpop.permute.xlu0 %341 }
 0x314   :  { %v344_v58 = vmul.f32 %v342_v57, %v339_v56 }
 0x316   :  { %v345_v59 = vadd.f32 %v344_v58, %v331_v43 }
 0x318   :  { %v346_v60 = vpack.c.bf16 %v345_v59, %v345_v59 }
 0x31a   :  { %851 = vmatmul.mubr.msk.bf16.vlgmr.msra.gmra.mrb[4].mxu1 %vm58_vm2, %v346_v60 }
 0x31b   :  { %687 = vmatprep.mubr.bf16.mxu1 %v224_v40  ;;  %781 = vmatpush3.bf16.msra.mxu1 %v902_v1 }
 0x31c   :  { %782 = vmatprep.subr.bf16.mxu1 %v903_v2 }
 0x31f   :  { %783 = vmatpush3.bf16.msra.mxu1 %v904_v0 }
 0x320   :  { %784 = vmatprep.subr.bf16.mxu1 %v905_v3 }
 0x323   :  { %785 = vmatpush3.bf16.msra.mxu1 %v906_v4 }
 0x324   :  { %786 = vmatprep.subr.bf16.mxu1 %v907_v5 }
 0x327   :  { %787 = vmatpush3.bf16.msra.mxu1 %v908_v6 }
 0x328   :  { %788 = vmatprep.subr.bf16.mxu1 %v909_v7 }
 0x32b   :  { %789 = vmatpush3.bf16.msra.mxu1 %v910_v8 }
 0x32c   :  { %790 = vmatprep.subr.bf16.mxu1 %v911_v9 }
 0x32f   :  { %791 = vmatpush3.bf16.msra.mxu1 %v912_v10 }
 0x330   :  { %792 = vmatprep.subr.bf16.mxu1 %v913_v20 }
 0x333   :  { %793 = vmatpush3.bf16.msra.mxu1 %v914_v21 }
 0x334   :  { %794 = vmatprep.subr.bf16.mxu1 %v915_v22 }
 0x337   :  { %795 = vmatpush3.bf16.msra.mxu1 %v916_v23 }
 0x3ed   :  { %v395_v12 = vpop.f32.mrb[4].mxu1 }
 0x3ee   :  { %v396_v13 = vadd.f32 %v721_v11, %v395_v12  ;;  %v852_v14 = vpop.f32.mrb[5].mxu1 }
 0x3ef   :  { %v398_v15 = vpop.f32.mrb[6].mxu1 }
 0x3f0   :  { %vm401_vm5 = vcmp.ge.f32.partialorder %v396_v13, 0.0  ;;  %v402_v16 = vmul.f32 0.01, %v396_v13  ;;  %v853_v17 = vpop.f32.mrb[7].mxu1 }
 0x3f2   :  { %v403_v18 = vsel %vm401_vm5, %v396_v13, %v402_v16 }
 0x3f3   :  { %v404_v19 = vpack.c.bf16 %v403_v18, %v403_v18 }
 0x3f5   :  { %871 = vmatmul.mubr.bf16.vlgmr.msra.gmra.mrb[8].mxu0 %v404_v19 }
 0x4c8   :  { %v510_v25 = vpop.f32.mrb[8].mxu0 }
 0x4c9   :  { %v511_v26 = vadd.f32 %v723_v24, %v510_v25  ;;  %v872_v27 = vpop.f32.mrb[9].mxu0 }
 0x4ca   :  { %v513_v28 = vpop.f32.mrb[10].mxu0 }
 0x4cb   :  { %vm516_vm6 = vcmp.ge.f32.partialorder %v511_v26, 0.0  ;;  %v517_v29 = vmul.f32 0.01, %v511_v26  ;;  %v873_v30 = vpop.f32.mrb[11].mxu0 }
 0x4cd   :  { %v518_v31 = vsel %vm516_vm6, %v511_v26, %v517_v29 }
 0x4ce   :  { %v519_v32 = vpack.c.bf16 %v518_v31, %v518_v31 }
 0x4d0   :  { %688 = vmatmul.mubr.bf16.vlgmr.msra.gmra.mrb[8].mxu1 %v519_v32 }
 0x5a3   :  { %v796_v33 = vpop.f32.mrb[8].mxu1 }
 0x5a4   :  { %v797_v35 = vpop.f32.mrb[9].mxu1 }
 0x5a5   :  { %v798_v36 = vadd.f32 %v797_v35, %v796_v33  ;;  %v799_v37 = vpop.f32.mrb[10].mxu1 }
 0x5a6   :  { %v800_v38 = vpop.f32.mrb[11].mxu1 }
 0x5a7   :  { %v690_v39 = vadd.f32 %v798_v36, %v732_v34 }
 0x5a9   :  { %696 = vst.msk [vmem:[%s1204_s14] sm:$0xff] %vm695_vm7, %v690_v39 }

</bundles_post_ra>
